<compile_context>
chip_gen: v7x
topology: tpu7x:2x2x1
jax: 0.10.0
libtpu: 0.0.40
codegen_flags: <defaults>
</compile_context>

<pallas_src>
import jax
import jax.numpy as jnp
from jax.experimental import pallas as pl
from jax.experimental.pallas import tpu as pltpu


def _make_lstm_linear_kernel(B, T, I, H, O):
    """Build the single-invocation LSTM (zero initial state) + Linear kernel."""

    def kernel(x_ref, wih_ref, whh_ref, b_ref, wlin_ref, blin_ref,
               y_ref, hbuf_ref):
        # x_ref:    (T*B, I)   time-major flattened input (row r = t*B + b)
        # wih_ref:  (I, 4H)  == W_ih^T
        # whh_ref:  (H, 4H)  == W_hh^T
        # b_ref:    (1, 4H)  == b_ih + b_hh
        # wlin_ref: (H, O), blin_ref: (1, O)
        # y_ref:    (T*B, O) time-major flattened output
        # hbuf_ref: (T*B, H) VMEM scratch of per-step hidden states
        w_ih = wih_ref[...]
        w_hh = whh_ref[...]
        bias = b_ref[...]

        # Hoisted input projection: one (T*B, I) @ (I, 4H) matmul for all
        # steps; only h @ W_hh^T remains inside the recurrence.
        xg = jnp.dot(x_ref[...], w_ih,
                     preferred_element_type=jnp.float32) + bias   # (T*B, 4H)

        # Hoisted lane mask selecting the 'g' (cell candidate) gate block.
        lane = jax.lax.broadcasted_iota(jnp.int32, (B, 4 * H), 1)
        g_block = (lane >= 2 * H) & (lane < 3 * H)

        # nn.LSTM with hidden_state=None starts from zero h0/c0.
        h = jnp.zeros((B, H), jnp.float32)
        c = jnp.zeros((B, H), jnp.float32)

        # TODO(synk): for scaled H on v7x, hold w_hh resident in the MXU via
        # pltpu.matmul_push_rhs / matmul_acc_lhs / matmul_pop; at H=32 each
        # step is a single MXU pass so jnp.dot is already minimal.
        for t in range(T):  # fully unrolled, static indices everywhere
            gates = xg[t * B:(t + 1) * B, :] + jnp.dot(
                h, w_hh, preferred_element_type=jnp.float32)       # (B, 4H)

            # Full-vreg activations (2 EUP evaluations instead of 4 partial
            # ones); PyTorch gate order along lanes is [i | f | g | o].
            act = jnp.where(g_block, jnp.tanh(gates), jax.nn.sigmoid(gates))

            i_g = act[:, 0 * H:1 * H]
            f_g = act[:, 1 * H:2 * H]
            g_g = act[:, 2 * H:3 * H]
            o_g = act[:, 3 * H:4 * H]

            c = f_g * c + i_g * g_g
            h = o_g * jnp.tanh(c)

            # B contiguous rows per step into the time-major scratch.
            hbuf_ref[t * B:(t + 1) * B, :] = h

        # Fused nn.Linear over all steps: one (T*B, H) @ (H, O) matmul and a
        # single output store (no reshape of the scratch needed).
        y = jnp.dot(hbuf_ref[...], wlin_ref[...],
                    preferred_element_type=jnp.float32) + blin_ref[...]
        y_ref[...] = y.astype(y_ref.dtype)

    return kernel


@jax.jit
def adversial_controller_forward(x, w_ih, w_hh, bias, w_lin, b_lin):
    """x: (B, T, I) batch_first, like the PyTorch module. Returns (B, T, O).

    Implements forward() with self.hidden_state == None (zero h0/c0).
    """
    # TODO(synk): the module's persistent self.hidden_state across calls
    # (forward / forward_once / reset) is Python-side state; thread (h0, c0)
    # in and (hN, cN) out of this kernel if that streaming behavior is needed.
    B, T, I = x.shape
    H = w_hh.shape[0]
    O = w_lin.shape[1]

    # Wrapper-side layout plumbing (free): time-major flat input slab.
    x_tm = jnp.transpose(x, (1, 0, 2)).reshape(T * B, I)

    vmem = pl.BlockSpec(memory_space=pltpu.MemorySpace.VMEM)
    kernel = _make_lstm_linear_kernel(B, T, I, H, O)

    y_tm = pl.pallas_call(
        kernel,
        out_shape=jax.ShapeDtypeStruct((T * B, O), jnp.float32),
        in_specs=[vmem] * 6,
        out_specs=vmem,
        scratch_shapes=[pltpu.VMEM((T * B, H), jnp.float32)],  # per-step h
    )(x_tm, w_ih, w_hh, bias, w_lin, b_lin)

    # (T*B, O) -> (B, T, O): wrapper-side reshape/transpose (layout plumbing).
    return jnp.transpose(y_tm.reshape(T, B, O), (1, 0, 2))


def _reference_forward(x, w_ih, w_hh, bias, w_lin, b_lin):
    """Pure-JAX reference (same math as PyTorch LSTM + Linear)."""
    B, T, _ = x.shape
    H = w_hh.shape[0]

    def step(carry, x_t):
        h, c = carry
        gates = x_t @ w_ih + h @ w_hh + bias[0]
        i_g = jax.nn.sigmoid(gates[:, 0 * H:1 * H])
        f_g = jax.nn.sigmoid(gates[:, 1 * H:2 * H])
        g_g = jnp.tanh(gates[:, 2 * H:3 * H])
        o_g = jax.nn.sigmoid(gates[:, 3 * H:4 * H])
        c = f_g * c + i_g * g_g
        h = o_g * jnp.tanh(c)
        y = h @ w_lin + b_lin[0]
        return (h, c), y

    h0 = jnp.zeros((B, H), jnp.float32)
    c0 = jnp.zeros((B, H), jnp.float32)
    _, ys = jax.lax.scan(step, (h0, c0), jnp.transpose(x, (1, 0, 2)))
    return jnp.transpose(ys, (1, 0, 2))


if __name__ == "__main__":
    # Module config (synthetic, deterministic).
    input_size, hidden_size, output_size = 4, 32, 2
    B, T = 2, 8

    key = jax.random.PRNGKey(0)
    k = jax.random.split(key, 8)
    bound = 1.0 / jnp.sqrt(hidden_size)  # PyTorch default uniform init bound

    # Parameters stored pre-transposed for the kernel:
    #   w_ih: (I, 4H) == W_ih^T ; w_hh: (H, 4H) == W_hh^T ; bias = b_ih + b_hh
    w_ih = jax.random.uniform(k[0], (input_size, 4 * hidden_size),
                              jnp.float32, -bound, bound)
    w_hh = jax.random.uniform(k[1], (hidden_size, 4 * hidden_size),
                              jnp.float32, -bound, bound)
    b_ih = jax.random.uniform(k[2], (4 * hidden_size,), jnp.float32, -bound, bound)
    b_hh = jax.random.uniform(k[3], (4 * hidden_size,), jnp.float32, -bound, bound)
    bias = (b_ih + b_hh).reshape(1, 4 * hidden_size)

    w_lin = jax.random.uniform(k[4], (hidden_size, output_size),
                               jnp.float32, -bound, bound)
    b_lin = jax.random.uniform(k[5], (output_size,), jnp.float32,
                               -bound, bound).reshape(1, output_size)

    x = jax.random.normal(k[6], (B, T, input_size), jnp.float32)

    y = adversial_controller_forward(x, w_ih, w_hh, bias, w_lin, b_lin)
    y = jax.block_until_ready(y)

    y_ref = _reference_forward(x, w_ih, w_hh, bias, w_lin, b_lin)
    assert y.shape == (B, T, output_size)
    assert jnp.allclose(y, y_ref, atol=1e-5, rtol=1e-5), "mismatch vs reference"

    print("KERNEL_OK")
</pallas_src>

<mosaic_0001>
module attributes {stable_mosaic.version = 11 : i64} {
  func.func @kernel(%arg0: memref<16x4xf32, #tpu.memory_space<vmem>>, %arg1: memref<4x128xf32, #tpu.memory_space<vmem>>, %arg2: memref<32x128xf32, #tpu.memory_space<vmem>>, %arg3: memref<1x128xf32, #tpu.memory_space<vmem>>, %arg4: memref<32x2xf32, #tpu.memory_space<vmem>>, %arg5: memref<1x2xf32, #tpu.memory_space<vmem>>, %arg6: memref<16x2xf32, #tpu.memory_space<vmem>>, %arg7: memref<16x32xf32, #tpu.memory_space<vmem>>) attributes {dimension_semantics = [], scalar_prefetch = 0 : i64, scratch_operands = 1 : i64, tpu.core_type = #tpu.core_type<tc>} {
    %c0 = arith.constant 0 : index
    %c0_0 = arith.constant 0 : index
    %0 = vector.load %arg1[%c0, %c0_0] : memref<4x128xf32, #tpu.memory_space<vmem>>, vector<4x128xf32>
    %c0_1 = arith.constant 0 : index
    %c0_2 = arith.constant 0 : index
    %1 = vector.load %arg2[%c0_1, %c0_2] : memref<32x128xf32, #tpu.memory_space<vmem>>, vector<32x128xf32>
    %c0_3 = arith.constant 0 : index
    %c0_4 = arith.constant 0 : index
    %2 = vector.load %arg3[%c0_3, %c0_4] : memref<1x128xf32, #tpu.memory_space<vmem>>, vector<1x128xf32>
    %c0_5 = arith.constant 0 : index
    %c0_6 = arith.constant 0 : index
    %3 = vector.load %arg0[%c0_5, %c0_6] : memref<16x4xf32, #tpu.memory_space<vmem>>, vector<16x4xf32>
    %cst = arith.constant dense<0.000000e+00> : vector<16x128xf32>
    %4 = tpu.matmul %3, %0, %cst {dimension_numbers = #tpu.dot_dimension_numbers<[1], [0], [0], [1], [0, 0, 1, 1], [], []>} : vector<16x4xf32>, vector<4x128xf32>, vector<16x128xf32> -> vector<16x128xf32>
    %5 = vector.broadcast %2 : vector<1x128xf32> to vector<16x128xf32>
    %6 = arith.addf %4, %5 : vector<16x128xf32>
    %7 = tpu.iota {dimensions = array<i32: 1>} : vector<2x128xi32>
    %c64_i32 = arith.constant 64 : i32
    %8 = vector.broadcast %c64_i32 : i32 to vector<2x128xi32>
    %9 = arith.cmpi sge, %7, %8 : vector<2x128xi32>
    %c96_i32 = arith.constant 96 : i32
    %10 = vector.broadcast %c96_i32 : i32 to vector<2x128xi32>
    %11 = arith.cmpi slt, %7, %10 : vector<2x128xi32>
    %12 = arith.andi %9, %11 : vector<2x128xi1>
    %cst_7 = arith.constant 0.000000e+00 : f32
    %13 = vector.broadcast %cst_7 : f32 to vector<2x32xf32>
    %cst_8 = arith.constant 0.000000e+00 : f32
    %14 = vector.broadcast %cst_8 : f32 to vector<2x32xf32>
    %15 = vector.extract_strided_slice %6 {offsets = [0, 0], sizes = [2, 128], strides = [1, 1]} : vector<16x128xf32> to vector<2x128xf32>
    %cst_9 = arith.constant dense<0.000000e+00> : vector<2x128xf32>
    %16 = tpu.matmul %13, %1, %cst_9 {dimension_numbers = #tpu.dot_dimension_numbers<[1], [0], [0], [1], [0, 0, 1, 1], [], []>} : vector<2x32xf32>, vector<32x128xf32>, vector<2x128xf32> -> vector<2x128xf32>
    %17 = arith.addf %15, %16 : vector<2x128xf32>
    %18 = math.tanh %17 : vector<2x128xf32>
    %19 = arith.negf %17 : vector<2x128xf32>
    %20 = math.exp %19 : vector<2x128xf32>
    %cst_10 = arith.constant 1.000000e+00 : f32
    %21 = vector.broadcast %cst_10 : f32 to vector<2x128xf32>
    %22 = arith.addf %21, %20 : vector<2x128xf32>
    %23 = arith.divf %21, %22 : vector<2x128xf32>
    %24 = arith.select %12, %18, %23 : vector<2x128xi1>, vector<2x128xf32>
    %25 = vector.extract_strided_slice %24 {offsets = [0, 0], sizes = [2, 32], strides = [1, 1]} : vector<2x128xf32> to vector<2x32xf32>
    %26 = vector.extract_strided_slice %24 {offsets = [0, 32], sizes = [2, 32], strides = [1, 1]} : vector<2x128xf32> to vector<2x32xf32>
    %27 = vector.extract_strided_slice %24 {offsets = [0, 64], sizes = [2, 32], strides = [1, 1]} : vector<2x128xf32> to vector<2x32xf32>
    %28 = vector.extract_strided_slice %24 {offsets = [0, 96], sizes = [2, 32], strides = [1, 1]} : vector<2x128xf32> to vector<2x32xf32>
    %29 = arith.mulf %26, %14 : vector<2x32xf32>
    %30 = arith.mulf %25, %27 : vector<2x32xf32>
    %31 = arith.addf %29, %30 : vector<2x32xf32>
    %32 = math.tanh %31 : vector<2x32xf32>
    %33 = arith.mulf %28, %32 : vector<2x32xf32>
    %c0_11 = arith.constant 0 : index
    %c0_12 = arith.constant 0 : index
    %34 = vector.load %arg7[%c0_11, %c0_12] : memref<16x32xf32, #tpu.memory_space<vmem>>, vector<2x32xf32>
    tpu.vector_store %arg7[%c0_11, %c0_12], %33 {strides = array<i32>} : memref<16x32xf32, #tpu.memory_space<vmem>>, vector<2x32xf32>,
    %35 = vector.extract_strided_slice %6 {offsets = [2, 0], sizes = [2, 128], strides = [1, 1]} : vector<16x128xf32> to vector<2x128xf32>
    %cst_13 = arith.constant dense<0.000000e+00> : vector<2x128xf32>
    %36 = tpu.matmul %33, %1, %cst_13 {dimension_numbers = #tpu.dot_dimension_numbers<[1], [0], [0], [1], [0, 0, 1, 1], [], []>} : vector<2x32xf32>, vector<32x128xf32>, vector<2x128xf32> -> vector<2x128xf32>
    %37 = arith.addf %35, %36 : vector<2x128xf32>
    %38 = math.tanh %37 : vector<2x128xf32>
    %39 = arith.negf %37 : vector<2x128xf32>
    %40 = math.exp %39 : vector<2x128xf32>
    %cst_14 = arith.constant 1.000000e+00 : f32
    %41 = vector.broadcast %cst_14 : f32 to vector<2x128xf32>
    %42 = arith.addf %41, %40 : vector<2x128xf32>
    %43 = arith.divf %41, %42 : vector<2x128xf32>
    %44 = arith.select %12, %38, %43 : vector<2x128xi1>, vector<2x128xf32>
    %45 = vector.extract_strided_slice %44 {offsets = [0, 0], sizes = [2, 32], strides = [1, 1]} : vector<2x128xf32> to vector<2x32xf32>
    %46 = vector.extract_strided_slice %44 {offsets = [0, 32], sizes = [2, 32], strides = [1, 1]} : vector<2x128xf32> to vector<2x32xf32>
    %47 = vector.extract_strided_slice %44 {offsets = [0, 64], sizes = [2, 32], strides = [1, 1]} : vector<2x128xf32> to vector<2x32xf32>
    %48 = vector.extract_strided_slice %44 {offsets = [0, 96], sizes = [2, 32], strides = [1, 1]} : vector<2x128xf32> to vector<2x32xf32>
    %49 = arith.mulf %46, %31 : vector<2x32xf32>
    %50 = arith.mulf %45, %47 : vector<2x32xf32>
    %51 = arith.addf %49, %50 : vector<2x32xf32>
    %52 = math.tanh %51 : vector<2x32xf32>
    %53 = arith.mulf %48, %52 : vector<2x32xf32>
    %c2 = arith.constant 2 : index
    %c0_15 = arith.constant 0 : index
    %54 = vector.load %arg7[%c2, %c0_15] : memref<16x32xf32, #tpu.memory_space<vmem>>, vector<2x32xf32>
    tpu.vector_store %arg7[%c2, %c0_15], %53 {strides = array<i32>} : memref<16x32xf32, #tpu.memory_space<vmem>>, vector<2x32xf32>,
    %55 = vector.extract_strided_slice %6 {offsets = [4, 0], sizes = [2, 128], strides = [1, 1]} : vector<16x128xf32> to vector<2x128xf32>
    %cst_16 = arith.constant dense<0.000000e+00> : vector<2x128xf32>
    %56 = tpu.matmul %53, %1, %cst_16 {dimension_numbers = #tpu.dot_dimension_numbers<[1], [0], [0], [1], [0, 0, 1, 1], [], []>} : vector<2x32xf32>, vector<32x128xf32>, vector<2x128xf32> -> vector<2x128xf32>
    %57 = arith.addf %55, %56 : vector<2x128xf32>
    %58 = math.tanh %57 : vector<2x128xf32>
    %59 = arith.negf %57 : vector<2x128xf32>
    %60 = math.exp %59 : vector<2x128xf32>
    %cst_17 = arith.constant 1.000000e+00 : f32
    %61 = vector.broadcast %cst_17 : f32 to vector<2x128xf32>
    %62 = arith.addf %61, %60 : vector<2x128xf32>
    %63 = arith.divf %61, %62 : vector<2x128xf32>
    %64 = arith.select %12, %58, %63 : vector<2x128xi1>, vector<2x128xf32>
    %65 = vector.extract_strided_slice %64 {offsets = [0, 0], sizes = [2, 32], strides = [1, 1]} : vector<2x128xf32> to vector<2x32xf32>
    %66 = vector.extract_strided_slice %64 {offsets = [0, 32], sizes = [2, 32], strides = [1, 1]} : vector<2x128xf32> to vector<2x32xf32>
    %67 = vector.extract_strided_slice %64 {offsets = [0, 64], sizes = [2, 32], strides = [1, 1]} : vector<2x128xf32> to vector<2x32xf32>
    %68 = vector.extract_strided_slice %64 {offsets = [0, 96], sizes = [2, 32], strides = [1, 1]} : vector<2x128xf32> to vector<2x32xf32>
    %69 = arith.mulf %66, %51 : vector<2x32xf32>
    %70 = arith.mulf %65, %67 : vector<2x32xf32>
    %71 = arith.addf %69, %70 : vector<2x32xf32>
    %72 = math.tanh %71 : vector<2x32xf32>
    %73 = arith.mulf %68, %72 : vector<2x32xf32>
    %c4 = arith.constant 4 : index
    %c0_18 = arith.constant 0 : index
    %74 = vector.load %arg7[%c4, %c0_18] : memref<16x32xf32, #tpu.memory_space<vmem>>, vector<2x32xf32>
    tpu.vector_store %arg7[%c4, %c0_18], %73 {strides = array<i32>} : memref<16x32xf32, #tpu.memory_space<vmem>>, vector<2x32xf32>,
    %75 = vector.extract_strided_slice %6 {offsets = [6, 0], sizes = [2, 128], strides = [1, 1]} : vector<16x128xf32> to vector<2x128xf32>
    %cst_19 = arith.constant dense<0.000000e+00> : vector<2x128xf32>
    %76 = tpu.matmul %73, %1, %cst_19 {dimension_numbers = #tpu.dot_dimension_numbers<[1], [0], [0], [1], [0, 0, 1, 1], [], []>} : vector<2x32xf32>, vector<32x128xf32>, vector<2x128xf32> -> vector<2x128xf32>
    %77 = arith.addf %75, %76 : vector<2x128xf32>
    %78 = math.tanh %77 : vector<2x128xf32>
    %79 = arith.negf %77 : vector<2x128xf32>
    %80 = math.exp %79 : vector<2x128xf32>
    %cst_20 = arith.constant 1.000000e+00 : f32
    %81 = vector.broadcast %cst_20 : f32 to vector<2x128xf32>
    %82 = arith.addf %81, %80 : vector<2x128xf32>
    %83 = arith.divf %81, %82 : vector<2x128xf32>
    %84 = arith.select %12, %78, %83 : vector<2x128xi1>, vector<2x128xf32>
    %85 = vector.extract_strided_slice %84 {offsets = [0, 0], sizes = [2, 32], strides = [1, 1]} : vector<2x128xf32> to vector<2x32xf32>
    %86 = vector.extract_strided_slice %84 {offsets = [0, 32], sizes = [2, 32], strides = [1, 1]} : vector<2x128xf32> to vector<2x32xf32>
    %87 = vector.extract_strided_slice %84 {offsets = [0, 64], sizes = [2, 32], strides = [1, 1]} : vector<2x128xf32> to vector<2x32xf32>
    %88 = vector.extract_strided_slice %84 {offsets = [0, 96], sizes = [2, 32], strides = [1, 1]} : vector<2x128xf32> to vector<2x32xf32>
    %89 = arith.mulf %86, %71 : vector<2x32xf32>
    %90 = arith.mulf %85, %87 : vector<2x32xf32>
    %91 = arith.addf %89, %90 : vector<2x32xf32>
    %92 = math.tanh %91 : vector<2x32xf32>
    %93 = arith.mulf %88, %92 : vector<2x32xf32>
    %c6 = arith.constant 6 : index
    %c0_21 = arith.constant 0 : index
    %94 = vector.load %arg7[%c6, %c0_21] : memref<16x32xf32, #tpu.memory_space<vmem>>, vector<2x32xf32>
    tpu.vector_store %arg7[%c6, %c0_21], %93 {strides = array<i32>} : memref<16x32xf32, #tpu.memory_space<vmem>>, vector<2x32xf32>,
    %95 = vector.extract_strided_slice %6 {offsets = [8, 0], sizes = [2, 128], strides = [1, 1]} : vector<16x128xf32> to vector<2x128xf32>
    %cst_22 = arith.constant dense<0.000000e+00> : vector<2x128xf32>
    %96 = tpu.matmul %93, %1, %cst_22 {dimension_numbers = #tpu.dot_dimension_numbers<[1], [0], [0], [1], [0, 0, 1, 1], [], []>} : vector<2x32xf32>, vector<32x128xf32>, vector<2x128xf32> -> vector<2x128xf32>
    %97 = arith.addf %95, %96 : vector<2x128xf32>
    %98 = math.tanh %97 : vector<2x128xf32>
    %99 = arith.negf %97 : vector<2x128xf32>
    %100 = math.exp %99 : vector<2x128xf32>
    %cst_23 = arith.constant 1.000000e+00 : f32
    %101 = vector.broadcast %cst_23 : f32 to vector<2x128xf32>
    %102 = arith.addf %101, %100 : vector<2x128xf32>
    %103 = arith.divf %101, %102 : vector<2x128xf32>
    %104 = arith.select %12, %98, %103 : vector<2x128xi1>, vector<2x128xf32>
    %105 = vector.extract_strided_slice %104 {offsets = [0, 0], sizes = [2, 32], strides = [1, 1]} : vector<2x128xf32> to vector<2x32xf32>
    %106 = vector.extract_strided_slice %104 {offsets = [0, 32], sizes = [2, 32], strides = [1, 1]} : vector<2x128xf32> to vector<2x32xf32>
    %107 = vector.extract_strided_slice %104 {offsets = [0, 64], sizes = [2, 32], strides = [1, 1]} : vector<2x128xf32> to vector<2x32xf32>
    %108 = vector.extract_strided_slice %104 {offsets = [0, 96], sizes = [2, 32], strides = [1, 1]} : vector<2x128xf32> to vector<2x32xf32>
    %109 = arith.mulf %106, %91 : vector<2x32xf32>
    %110 = arith.mulf %105, %107 : vector<2x32xf32>
    %111 = arith.addf %109, %110 : vector<2x32xf32>
    %112 = math.tanh %111 : vector<2x32xf32>
    %113 = arith.mulf %108, %112 : vector<2x32xf32>
    %c8 = arith.constant 8 : index
    %c0_24 = arith.constant 0 : index
    %114 = vector.load %arg7[%c8, %c0_24] : memref<16x32xf32, #tpu.memory_space<vmem>>, vector<2x32xf32>
    tpu.vector_store %arg7[%c8, %c0_24], %113 {strides = array<i32>} : memref<16x32xf32, #tpu.memory_space<vmem>>, vector<2x32xf32>,
    %115 = vector.extract_strided_slice %6 {offsets = [10, 0], sizes = [2, 128], strides = [1, 1]} : vector<16x128xf32> to vector<2x128xf32>
    %cst_25 = arith.constant dense<0.000000e+00> : vector<2x128xf32>
    %116 = tpu.matmul %113, %1, %cst_25 {dimension_numbers = #tpu.dot_dimension_numbers<[1], [0], [0], [1], [0, 0, 1, 1], [], []>} : vector<2x32xf32>, vector<32x128xf32>, vector<2x128xf32> -> vector<2x128xf32>
    %117 = arith.addf %115, %116 : vector<2x128xf32>
    %118 = math.tanh %117 : vector<2x128xf32>
    %119 = arith.negf %117 : vector<2x128xf32>
    %120 = math.exp %119 : vector<2x128xf32>
    %cst_26 = arith.constant 1.000000e+00 : f32
    %121 = vector.broadcast %cst_26 : f32 to vector<2x128xf32>
    %122 = arith.addf %121, %120 : vector<2x128xf32>
    %123 = arith.divf %121, %122 : vector<2x128xf32>
    %124 = arith.select %12, %118, %123 : vector<2x128xi1>, vector<2x128xf32>
    %125 = vector.extract_strided_slice %124 {offsets = [0, 0], sizes = [2, 32], strides = [1, 1]} : vector<2x128xf32> to vector<2x32xf32>
    %126 = vector.extract_strided_slice %124 {offsets = [0, 32], sizes = [2, 32], strides = [1, 1]} : vector<2x128xf32> to vector<2x32xf32>
    %127 = vector.extract_strided_slice %124 {offsets = [0, 64], sizes = [2, 32], strides = [1, 1]} : vector<2x128xf32> to vector<2x32xf32>
    %128 = vector.extract_strided_slice %124 {offsets = [0, 96], sizes = [2, 32], strides = [1, 1]} : vector<2x128xf32> to vector<2x32xf32>
    %129 = arith.mulf %126, %111 : vector<2x32xf32>
    %130 = arith.mulf %125, %127 : vector<2x32xf32>
    %131 = arith.addf %129, %130 : vector<2x32xf32>
    %132 = math.tanh %131 : vector<2x32xf32>
    %133 = arith.mulf %128, %132 : vector<2x32xf32>
    %c10 = arith.constant 10 : index
    %c0_27 = arith.constant 0 : index
    %134 = vector.load %arg7[%c10, %c0_27] : memref<16x32xf32, #tpu.memory_space<vmem>>, vector<2x32xf32>
    tpu.vector_store %arg7[%c10, %c0_27], %133 {strides = array<i32>} : memref<16x32xf32, #tpu.memory_space<vmem>>, vector<2x32xf32>,
    %135 = vector.extract_strided_slice %6 {offsets = [12, 0], sizes = [2, 128], strides = [1, 1]} : vector<16x128xf32> to vector<2x128xf32>
    %cst_28 = arith.constant dense<0.000000e+00> : vector<2x128xf32>
    %136 = tpu.matmul %133, %1, %cst_28 {dimension_numbers = #tpu.dot_dimension_numbers<[1], [0], [0], [1], [0, 0, 1, 1], [], []>} : vector<2x32xf32>, vector<32x128xf32>, vector<2x128xf32> -> vector<2x128xf32>
    %137 = arith.addf %135, %136 : vector<2x128xf32>
    %138 = math.tanh %137 : vector<2x128xf32>
    %139 = arith.negf %137 : vector<2x128xf32>
    %140 = math.exp %139 : vector<2x128xf32>
    %cst_29 = arith.constant 1.000000e+00 : f32
    %141 = vector.broadcast %cst_29 : f32 to vector<2x128xf32>
    %142 = arith.addf %141, %140 : vector<2x128xf32>
    %143 = arith.divf %141, %142 : vector<2x128xf32>
    %144 = arith.select %12, %138, %143 : vector<2x128xi1>, vector<2x128xf32>
    %145 = vector.extract_strided_slice %144 {offsets = [0, 0], sizes = [2, 32], strides = [1, 1]} : vector<2x128xf32> to vector<2x32xf32>
    %146 = vector.extract_strided_slice %144 {offsets = [0, 32], sizes = [2, 32], strides = [1, 1]} : vector<2x128xf32> to vector<2x32xf32>
    %147 = vector.extract_strided_slice %144 {offsets = [0, 64], sizes = [2, 32], strides = [1, 1]} : vector<2x128xf32> to vector<2x32xf32>
    %148 = vector.extract_strided_slice %144 {offsets = [0, 96], sizes = [2, 32], strides = [1, 1]} : vector<2x128xf32> to vector<2x32xf32>
    %149 = arith.mulf %146, %131 : vector<2x32xf32>
    %150 = arith.mulf %145, %147 : vector<2x32xf32>
    %151 = arith.addf %149, %150 : vector<2x32xf32>
    %152 = math.tanh %151 : vector<2x32xf32>
    %153 = arith.mulf %148, %152 : vector<2x32xf32>
    %c12 = arith.constant 12 : index
    %c0_30 = arith.constant 0 : index
    %154 = vector.load %arg7[%c12, %c0_30] : memref<16x32xf32, #tpu.memory_space<vmem>>, vector<2x32xf32>
    tpu.vector_store %arg7[%c12, %c0_30], %153 {strides = array<i32>} : memref<16x32xf32, #tpu.memory_space<vmem>>, vector<2x32xf32>,
    %155 = vector.extract_strided_slice %6 {offsets = [14, 0], sizes = [2, 128], strides = [1, 1]} : vector<16x128xf32> to vector<2x128xf32>
    %cst_31 = arith.constant dense<0.000000e+00> : vector<2x128xf32>
    %156 = tpu.matmul %153, %1, %cst_31 {dimension_numbers = #tpu.dot_dimension_numbers<[1], [0], [0], [1], [0, 0, 1, 1], [], []>} : vector<2x32xf32>, vector<32x128xf32>, vector<2x128xf32> -> vector<2x128xf32>
    %157 = arith.addf %155, %156 : vector<2x128xf32>
    %158 = math.tanh %157 : vector<2x128xf32>
    %159 = arith.negf %157 : vector<2x128xf32>
    %160 = math.exp %159 : vector<2x128xf32>
    %cst_32 = arith.constant 1.000000e+00 : f32
    %161 = vector.broadcast %cst_32 : f32 to vector<2x128xf32>
    %162 = arith.addf %161, %160 : vector<2x128xf32>
    %163 = arith.divf %161, %162 : vector<2x128xf32>
    %164 = arith.select %12, %158, %163 : vector<2x128xi1>, vector<2x128xf32>
    %165 = vector.extract_strided_slice %164 {offsets = [0, 0], sizes = [2, 32], strides = [1, 1]} : vector<2x128xf32> to vector<2x32xf32>
    %166 = vector.extract_strided_slice %164 {offsets = [0, 32], sizes = [2, 32], strides = [1, 1]} : vector<2x128xf32> to vector<2x32xf32>
    %167 = vector.extract_strided_slice %164 {offsets = [0, 64], sizes = [2, 32], strides = [1, 1]} : vector<2x128xf32> to vector<2x32xf32>
    %168 = vector.extract_strided_slice %164 {offsets = [0, 96], sizes = [2, 32], strides = [1, 1]} : vector<2x128xf32> to vector<2x32xf32>
    %169 = arith.mulf %166, %151 : vector<2x32xf32>
    %170 = arith.mulf %165, %167 : vector<2x32xf32>
    %171 = arith.addf %169, %170 : vector<2x32xf32>
    %172 = math.tanh %171 : vector<2x32xf32>
    %173 = arith.mulf %168, %172 : vector<2x32xf32>
    %c14 = arith.constant 14 : index
    %c0_33 = arith.constant 0 : index
    %174 = vector.load %arg7[%c14, %c0_33] : memref<16x32xf32, #tpu.memory_space<vmem>>, vector<2x32xf32>
    tpu.vector_store %arg7[%c14, %c0_33], %173 {strides = array<i32>} : memref<16x32xf32, #tpu.memory_space<vmem>>, vector<2x32xf32>,
    %c0_34 = arith.constant 0 : index
    %c0_35 = arith.constant 0 : index
    %175 = vector.load %arg7[%c0_34, %c0_35] : memref<16x32xf32, #tpu.memory_space<vmem>>, vector<16x32xf32>
    %c0_36 = arith.constant 0 : index
    %c0_37 = arith.constant 0 : index
    %176 = vector.load %arg4[%c0_36, %c0_37] : memref<32x2xf32, #tpu.memory_space<vmem>>, vector<32x2xf32>
    %cst_38 = arith.constant dense<0.000000e+00> : vector<16x2xf32>
    %177 = tpu.matmul %175, %176, %cst_38 {dimension_numbers = #tpu.dot_dimension_numbers<[1], [0], [0], [1], [0, 0, 1, 1], [], []>} : vector<16x32xf32>, vector<32x2xf32>, vector<16x2xf32> -> vector<16x2xf32>
    %c0_39 = arith.constant 0 : index
    %c0_40 = arith.constant 0 : index
    %178 = vector.load %arg5[%c0_39, %c0_40] : memref<1x2xf32, #tpu.memory_space<vmem>>, vector<1x2xf32>
    %179 = vector.broadcast %178 : vector<1x2xf32> to vector<16x2xf32>
    %180 = arith.addf %177, %179 : vector<16x2xf32>
    %c0_41 = arith.constant 0 : index
    %c0_42 = arith.constant 0 : index
    %181 = vector.load %arg6[%c0_41, %c0_42] : memref<16x2xf32, #tpu.memory_space<vmem>>, vector<16x2xf32>
    tpu.vector_store %arg6[%c0_41, %c0_42], %180 {strides = array<i32>} : memref<16x2xf32, #tpu.memory_space<vmem>>, vector<16x2xf32>,
    return
  }
}

</mosaic_0001>

<bundles_post_ra>
// kernel: adversial_controller_forward.1
= control target key start
LH: loop header
LB: loop body
LE: loop exit
PB: predicated region body
PF: predicated region fallthrough
CT: control target
= control target key end

     0   :  { %vm44_vm0 = vcmask 1043456   ;;  %vm37_vm1 = vcmask 31744   ;;  %v1413_v0 = vmov 0.0|0.0   ;;  %vm1414_vm2 = vmmov 0   ;;  %s1417_s10 = smov 32   ;;  %s1657_s2 = inlined_call_operand.vmem [shape: f32[32,128], index: 2, kind: input, shape index: {}]   ;;  %s1658_s1 = inlined_call_operand.vmem [shape: f32[4,128], index: 1, kind: input, shape index: {}]   ;;  %s1659_s0 = inlined_call_operand.vmem [shape: f32[16,4], index: 0, kind: input, shape index: {}]   ;;  %s1660_s3 = inlined_call_operand.vmem [shape: f32[1,128], index: 3, kind: input, shape index: {}]   ;;  %s1661_s4 = inlined_call_operand.vmem [shape: f32[32,2], index: 4, kind: input, shape index: {}]   ;;  %s1662_s5 = inlined_call_operand.vmem [shape: f32[1,2], index: 5, kind: input, shape index: {}]   ;;  %s1663_s6 = inlined_call_operand.vmem [shape: f32[16,2], index: 6, kind: output, shape index: {}]  }
   0x1   :  { %1288 = vmatprep.subr.bf16.mxu1 %v1413_v0  ;;  %v24_v1 = vld [vmem:[%s1657_s2] sm:$0xff]  ;;  %v25_v2 = vld [vmem:[%s1657_s2 + $0x8] sm:$0xff]  ;;  %v26_v7 = vld [vmem:[%s1657_s2 + $0x10] sm:$0xff]  ;;  %v1415_v8 = vmov 0.0   ;;  %v123_v21 = vlaneseq  ;;  %vm232_vm6 = vcmask 254976   ;;  %vm128_vm7 = vcmask 261120  }
   0x2   :  { %v23_v3 = vld [vmem:[%s1658_s1] sm:$0xf]  ;;  %v1463_v4 = vpack.c.bf16 %v25_v2, %v24_v1  ;;  %v30_v6 = vld [vmem:[%s1659_s0 + $0x8] sm:$0xff]  ;;  %1197 = vmatprep.mubr.msk.f32.mxu1 %vm1414_vm2, %v1415_v8  ;;  %v27_v9 = vld [vmem:[%s1657_s2 + $0x18] sm:$0xff]  ;;  %vm342_vm8 = vcmask 257026   ;;  %vm568_vm9 = vcmask 261126  }
   0x3   :  { %1184 = vmatprep.subr.msk.mxu0 %vm44_vm0, %v23_v3  ;;  %v29_v5 = vld [vmem:[%s1659_s0] sm:$0xff]  ;;  %v1484_v10 = vpack.c.bf16 %v27_v9, %v26_v7  ;;  %v124_v23 = vand.u32 127, %v123_v21  ;;  %vm455_vm10 = vcmask 259076   ;;  %vm1106_vm11 = vcmask 15360  }
   0x4   :  { %1185 = vmatpush3.msk.msra.mxu0 %vm44_vm0, %v23_v3  ;;  %1186 = vmatprep.mubr.msk.f32.mxu0 %vm37_vm1, %v29_v5  ;;  %v1113_v11 = vld [vmem:[%s1660_s3] ss:$0 sm:$0xff]  ;;  %s1416_s3 = smov 64  }
   0x5   :  { %1290 = vmatpush3.bf16.msra.mxu1 %v1463_v4  ;;  %1187 = vmatmul.mubr.msk.f32.vlgmr.msra.gmra.mrb[0].mxu0 %vm37_vm1, %v30_v6  ;;  %vm125_vm3 = vcmp.ge.s32.totalorder %v124_v23, 64  ;;  %vm126_vm4 = vcmp.lt.s32.totalorder %v124_v23, 96 }
   0x6   :  { %1291 = vmatprep.subr.bf16.mxu1 %v1413_v0  ;;  %1294 = vmatprep.subr.bf16.mxu0 %v1413_v0  ;;  %vm1511_vm5 = vmand %vm125_vm3, %vm126_vm4 }
   0x7   :  { %1296 = vmatpush3.bf16.msra.mxu0 %v1463_v4  ;;  %1208 = vmatprep.mubr.msk.f32.mxu0 %vm1414_vm2, %v1415_v8 }
   0x8   :  { %1297 = vmatprep.subr.bf16.mxu0 %v1413_v0 }
   0x9   :  { %1293 = vmatpush3.bf16.msra.mxu1 %v1484_v10 }
   0xa   :  { %1300 = vmatprep.subr.bf16.mxu1 %v1413_v0 }
   0xb   :  { %1299 = vmatpush3.bf16.msra.mxu0 %v1484_v10 }
   0xc   :  { %1198 = vmatmul.mubr.f32.vlgmr.msra.gmra.mrb[0].mxu1 %v1415_v8  ;;  %1306 = vmatprep.subr.bf16.mxu0 %v1413_v0 }
   0xd   :  { %1302 = vmatpush3.bf16.msra.mxu1 %v1463_v4  ;;  %1219 = vmatprep.mubr.msk.f32.mxu1 %vm1414_vm2, %v1415_v8 }
   0xe   :  { %1303 = vmatprep.subr.bf16.mxu1 %v1413_v0 }
  0x11   :  { %1305 = vmatpush3.bf16.msra.mxu1 %v1484_v10 }
  0x12   :  { %1312 = vmatprep.subr.bf16.mxu1 %v1413_v0 }
  0xd8   :  { %v1188_v12 = vpop.f32.mrb[0].mxu0 }
  0xd9   :  { %v1506_v13 = vadd.f32 %v1188_v12, %v1113_v11  ;;  %v114_v14 = vpop.f32.mrb[1].mxu0 }
  0xda   :  { %v1508_v15 = vadd.f32 %v1113_v11, %v114_v14 }
  0xdf   :  { %v198_v16 = vpop.f32.mrb[0].mxu1 }
  0xe0   :  { %v202_v17 = vadd.f32 %v198_v16, %v1508_v15  ;;  %v1199_v18 = vpop.f32.mrb[1].mxu1 }
  0xe2   :  { %v1117_v19 = vmul.f32 -1.442695, %v202_v17 }
  0xe4   :  { %1349 = vpow2.f32 %v1117_v19 }
  0xe5   :  { %1351 = vtanh.f32 %v202_v17 }
  0xee   :  { %v1350_v20 = vpop.eup %1349 }
  0xef   :  { %v207_v22 = vadd.f32 1.0, %v1350_v20  ;;  %v1352_v25 = vpop.eup %1351 }
  0xf1   :  { %1353 = vrcp.f32 %v207_v22 }
  0xfb   :  { %v1354_v26 = vpop.eup %1353 }
  0xfc   :  { %v210_v27 = vsel %vm1511_vm5, %v1352_v25, %v1354_v26 }
  0xfd   :  { %213 = vrot.lane.b32.xlu0 %v210_v27, %s1416_s3  ;;  %v211_v30 = vmul.f32 0.0, %v210_v27 }
 0x16f   :  { %v214_v28 = vpop.permute.xlu0 %213 }
 0x170   :  { %v216_v29 = vmul.f32 %v214_v28, %v210_v27 }
 0x172   :  { %218 = vrot.lane.b32.xlu0 %v216_v29, %s1417_s10 }
 0x1e4   :  { %v219_v31 = vpop.permute.xlu0 %218 }
 0x1e5   :  { %v221_v32 = vadd.f32 %v219_v31, %v211_v30 }
 0x1e7   :  { %1355 = vtanh.f32 %v221_v32  ;;  %v319_v49 = vrot.slane %v221_v32, 6 }
 0x1f1   :  { %v1356_v33 = vpop.eup %1355 }
 0x1f2   :  { %224 = vrot.lane.b32.xlu1 %v1356_v33, %s1416_s3 }
 0x264   :  { %v225_v34 = vpop.permute.xlu1 %224 }
 0x265   :  { %v227_v35 = vmul.f32 %v225_v34, %v210_v27 }
 0x267   :  { %229 = vrot.lane.b32.xlu1 %v227_v35, %s1417_s10 }
 0x2d9   :  { %v230_v36 = vpop.permute.xlu1 %229 }
 0x2da   :  { %233 = vst.msk [vmem:[#allocation2] sm:$0x3] %vm232_vm6, %v230_v36  ;;  %1209 = vmatmul.mubr.msk.f32.vlgmr.msra.gmra.mrb[2].mxu0 %vm128_vm7, %v230_v36 }
 0x2db   :  { %1308 = vmatpush3.bf16.msra.mxu0 %v1463_v4  ;;  %1230 = vmatprep.mubr.msk.f32.mxu0 %vm1414_vm2, %v1415_v8 }
 0x2dc   :  { %1309 = vmatprep.subr.bf16.mxu0 %v1413_v0 }
 0x2df   :  { %1311 = vmatpush3.bf16.msra.mxu0 %v1484_v10 }
 0x2e0   :  { %1318 = vmatprep.subr.bf16.mxu0 %v1413_v0 }
 0x3ad   :  { %v302_v37 = vpop.f32.mrb[2].mxu0 }
 0x3ae   :  { %v307_v38 = vrot.slane %v302_v37, 6  ;;  %v1210_v39 = vpop.f32.mrb[3].mxu0 }
 0x3b0   :  { %v309_v40 = vadd.f32 %v307_v38, %v1508_v15 }
 0x3b2   :  { %v1119_v41 = vmul.f32 -1.442695, %v309_v40 }
 0x3b4   :  { %1357 = vpow2.f32 %v1119_v41 }
 0x3b5   :  { %1359 = vtanh.f32 %v309_v40 }
 0x3be   :  { %v1358_v42 = vpop.eup %1357 }
 0x3bf   :  { %v314_v43 = vadd.f32 1.0, %v1358_v42  ;;  %v1360_v44 = vpop.eup %1359 }
 0x3c1   :  { %1361 = vrcp.f32 %v314_v43 }
 0x3cb   :  { %v1362_v45 = vpop.eup %1361 }
 0x3cc   :  { %v317_v46 = vsel %vm1511_vm5, %v1360_v44, %v1362_v45 }
 0x3cd   :  { %323 = vrot.lane.b32.xlu0 %v317_v46, %s1416_s3  ;;  %v321_v50 = vmul.f32 %v319_v49, %v317_v46 }
 0x43f   :  { %v324_v47 = vpop.permute.xlu0 %323 }
 0x440   :  { %v326_v48 = vmul.f32 %v324_v47, %v317_v46 }
 0x442   :  { %328 = vrot.lane.b32.xlu1 %v326_v48, %s1417_s10 }
 0x4b4   :  { %v329_v51 = vpop.permute.xlu1 %328 }
 0x4b5   :  { %v331_v52 = vadd.f32 %v329_v51, %v321_v50 }
 0x4b7   :  { %1363 = vtanh.f32 %v331_v52  ;;  %v432_v9 = vrot.slane %v331_v52, 6 }
 0x4c1   :  { %v1364_v53 = vpop.eup %1363 }
 0x4c2   :  { %334 = vrot.lane.b32.xlu0 %v1364_v53, %s1416_s3 }
 0x534   :  { %v335_v54 = vpop.permute.xlu0 %334 }
 0x535   :  { %v1535_v55 = vmul.f32 %v335_v54, %v317_v46 }
 0x537   :  { %v344_v56 = vrot.slane %v1535_v55, 2 }
 0x539   :  { %345 = vrot.lane.b32.xlu1 %v344_v56, %s1417_s10 }
 0x5ab   :  { %v346_v57 = vpop.permute.xlu1 %345 }
 0x5ac   :  { %1220 = vmatmul.mubr.msk.f32.vlgmr.msra.gmra.mrb[2].mxu1 %vm128_vm7, %v346_v57 }
 0x5ad   :  { %1314 = vmatpush3.bf16.msra.mxu1 %v1463_v4  ;;  %1241 = vmatprep.mubr.msk.f32.mxu1 %vm1414_vm2, %v1415_v8 }
 0x5ae   :  { %1315 = vmatprep.subr.bf16.mxu1 %v1413_v0 }
 0x5b1   :  { %1317 = vmatpush3.bf16.msra.mxu1 %v1484_v10 }
 0x5b2   :  { %1324 = vmatprep.subr.bf16.mxu1 %v1413_v0 }
 0x67f   :  { %v415_v58 = vpop.f32.mrb[2].mxu1 }
 0x680   :  { %v420_v59 = vrot.slane %v415_v58, 4  ;;  %v1221_v60 = vpop.f32.mrb[3].mxu1 }
 0x682   :  { %v422_v61 = vadd.f32 %v420_v59, %v1508_v15 }
 0x684   :  { %v1121_v62 = vmul.f32 -1.442695, %v422_v61 }
 0x686   :  { %1365 = vpow2.f32 %v1121_v62 }
 0x687   :  { %1367 = vtanh.f32 %v422_v61 }
 0x690   :  { %v1366_v63 = vpop.eup %1365 }
 0x691   :  { %v427_v1 = vadd.f32 1.0, %v1366_v63  ;;  %v1368_v2 = vpop.eup %1367 }
 0x693   :  { %1369 = vrcp.f32 %v427_v1 }
 0x69d   :  { %v1370_v3 = vpop.eup %1369 }
 0x69e   :  { %v430_v5 = vsel %vm1511_vm5, %v1368_v2, %v1370_v3 }
 0x69f   :  { %436 = vrot.lane.b32.xlu0 %v430_v5, %s1416_s3  ;;  %v434_v11 = vmul.f32 %v432_v9, %v430_v5 }
 0x711   :  { %v437_v6 = vpop.permute.xlu0 %436 }
 0x712   :  { %v439_v7 = vmul.f32 %v437_v6, %v430_v5 }
 0x714   :  { %441 = vrot.lane.b32.xlu1 %v439_v7, %s1417_s10 }
 0x786   :  { %v442_v12 = vpop.permute.xlu1 %441 }
 0x787   :  { %v444_v14 = vadd.f32 %v442_v12, %v434_v11 }
 0x789   :  { %1371 = vtanh.f32 %v444_v14  ;;  %v545_v34 = vrot.slane %v444_v14, 6 }
 0x793   :  { %v1372_v16 = vpop.eup %1371 }
 0x794   :  { %447 = vrot.lane.b32.xlu0 %v1372_v16, %s1416_s3 }
 0x806   :  { %v448_v17 = vpop.permute.xlu0 %447 }
 0x807   :  { %v1552_v18 = vmul.f32 %v448_v17, %v430_v5 }
 0x809   :  { %v457_v19 = vrot.slane %v1552_v18, 4 }
 0x80b   :  { %458 = vrot.lane.b32.xlu1 %v457_v19, %s1417_s10 }
 0x87d   :  { %v459_v20 = vpop.permute.xlu1 %458 }
 0x87e   :  { %1231 = vmatmul.mubr.msk.f32.vlgmr.msra.gmra.mrb[4].mxu0 %vm128_vm7, %v459_v20 }
 0x87f   :  { %1320 = vmatpush3.bf16.msra.mxu0 %v1463_v4  ;;  %1252 = vmatprep.mubr.msk.f32.mxu0 %vm1414_vm2, %v1415_v8 }
 0x880   :  { %1321 = vmatprep.subr.bf16.mxu0 %v1413_v0 }
 0x883   :  { %1323 = vmatpush3.bf16.msra.mxu0 %v1484_v10 }
 0x884   :  { %1330 = vmatprep.subr.bf16.mxu0 %v1413_v0 }
 0x951   :  { %v528_v21 = vpop.f32.mrb[4].mxu0 }
 0x952   :  { %v533_v22 = vrot.slane %v528_v21, 2  ;;  %v1232_v23 = vpop.f32.mrb[5].mxu0 }
 0x954   :  { %v535_v25 = vadd.f32 %v533_v22, %v1508_v15 }
 0x956   :  { %v1123_v26 = vmul.f32 -1.442695, %v535_v25 }
 0x958   :  { %1373 = vpow2.f32 %v1123_v26 }
 0x959   :  { %1375 = vtanh.f32 %v535_v25 }
 0x962   :  { %v1374_v27 = vpop.eup %1373 }
 0x963   :  { %v540_v28 = vadd.f32 1.0, %v1374_v27  ;;  %v1376_v29 = vpop.eup %1375 }
 0x965   :  { %1377 = vrcp.f32 %v540_v28 }
 0x96f   :  { %v1378_v30 = vpop.eup %1377 }
 0x970   :  { %v543_v31 = vsel %vm1511_vm5, %v1376_v29, %v1378_v30 }
 0x971   :  { %549 = vrot.lane.b32.xlu0 %v543_v31, %s1416_s3  ;;  %v547_v35 = vmul.f32 %v545_v34, %v543_v31 }
 0x9e3   :  { %v550_v32 = vpop.permute.xlu0 %549 }
 0x9e4   :  { %v552_v33 = vmul.f32 %v550_v32, %v543_v31 }
 0x9e6   :  { %554 = vrot.lane.b32.xlu1 %v552_v33, %s1417_s10 }
 0xa58   :  { %v555_v15 = vpop.permute.xlu1 %554 }
 0xa59   :  { %v557_v36 = vadd.f32 %v555_v15, %v547_v35 }
 0xa5b   :  { %1379 = vtanh.f32 %v557_v36  ;;  %v655_v53 = vrot.slane %v557_v36, 6 }
 0xa65   :  { %v1380_v37 = vpop.eup %1379 }
 0xa66   :  { %560 = vrot.lane.b32.xlu0 %v1380_v37, %s1416_s3 }
 0xad8   :  { %v561_v38 = vpop.permute.xlu0 %560 }
 0xad9   :  { %v1569_v39 = vmul.f32 %v561_v38, %v543_v31 }
 0xadb   :  { %v570_v40 = vrot.slane %v1569_v39, 6 }
 0xadd   :  { %571 = vrot.lane.b32.xlu1 %v570_v40, %s1417_s10 }
 0xb4f   :  { %v572_v41 = vpop.permute.xlu1 %571 }
 0xb50   :  { %1242 = vmatmul.mubr.msk.f32.vlgmr.msra.gmra.mrb[4].mxu1 %vm128_vm7, %v572_v41 }
 0xb51   :  { %1326 = vmatpush3.bf16.msra.mxu1 %v1463_v4  ;;  %1263 = vmatprep.mubr.msk.f32.mxu1 %vm1414_vm2, %v1415_v8 }
 0xb52   :  { %1327 = vmatprep.subr.bf16.mxu1 %v1413_v0 }
 0xb55   :  { %1329 = vmatpush3.bf16.msra.mxu1 %v1484_v10 }
 0xc23   :  { %v641_v42 = vpop.f32.mrb[4].mxu1 }
 0xc24   :  { %v645_v43 = vadd.f32 %v641_v42, %v1506_v13  ;;  %v1243_v44 = vpop.f32.mrb[5].mxu1 }
 0xc26   :  { %v1125_v45 = vmul.f32 -1.442695, %v645_v43 }
 0xc28   :  { %1381 = vpow2.f32 %v1125_v45 }
 0xc29   :  { %1383 = vtanh.f32 %v645_v43 }
 0xc32   :  { %v1382_v46 = vpop.eup %1381 }
 0xc33   :  { %v650_v47 = vadd.f32 1.0, %v1382_v46  ;;  %v1384_v48 = vpop.eup %1383 }
 0xc35   :  { %1385 = vrcp.f32 %v650_v47 }
 0xc3f   :  { %v1386_v49 = vpop.eup %1385 }
 0xc40   :  { %v653_v50 = vsel %vm1511_vm5, %v1384_v48, %v1386_v49 }
 0xc41   :  { %659 = vrot.lane.b32.xlu0 %v653_v50, %s1416_s3  ;;  %v657_v54 = vmul.f32 %v655_v53, %v653_v50 }
 0xcb3   :  { %v660_v51 = vpop.permute.xlu0 %659 }
 0xcb4   :  { %v662_v52 = vmul.f32 %v660_v51, %v653_v50 }
 0xcb6   :  { %664 = vrot.lane.b32.xlu1 %v662_v52, %s1417_s10 }
 0xd28   :  { %v665_v56 = vpop.permute.xlu1 %664 }
 0xd29   :  { %v667_v57 = vadd.f32 %v665_v56, %v657_v54 }
 0xd2b   :  { %1387 = vtanh.f32 %v667_v57  ;;  %v764_v9 = vrot.slane %v667_v57, 6 }
 0xd35   :  { %v1388_v58 = vpop.eup %1387 }
 0xd36   :  { %670 = vrot.lane.b32.xlu0 %v1388_v58, %s1416_s3 }
 0xda8   :  { %v671_v59 = vpop.permute.xlu0 %670 }
 0xda9   :  { %v673_v60 = vmul.f32 %v671_v59, %v653_v50 }
 0xdab   :  { %675 = vrot.lane.b32.xlu1 %v673_v60, %s1417_s10 }
 0xe1d   :  { %v676_v61 = vpop.permute.xlu1 %675 }
 0xe1e   :  { %678 = vst.msk [vmem:[#allocation2 + $0x8] sm:$0x3] %vm232_vm6, %v676_v61  ;;  %1253 = vmatmul.mubr.msk.f32.vlgmr.msra.gmra.mrb[6].mxu0 %vm128_vm7, %v676_v61 }
 0xe1f   :  { %1332 = vmatpush3.bf16.msra.mxu0 %v1463_v4  ;;  %1274 = vmatprep.mubr.msk.f32.mxu0 %vm1414_vm2, %v1415_v8 }
 0xe20   :  { %1333 = vmatprep.subr.bf16.mxu0 %v1413_v0 }
 0xe23   :  { %1335 = vmatpush3.bf16.msra.mxu0 %v1484_v10 }
 0xef1   :  { %v747_v62 = vpop.f32.mrb[6].mxu0 }
 0xef2   :  { %v752_v63 = vrot.slane %v747_v62, 6  ;;  %v1254_v1 = vpop.f32.mrb[7].mxu0  ;;  %v1015_v62 = vld [vmem:[%s1661_s4 + $0x8] sm:$0xff] }
 0xef3   :  { %v1016_v1 = vld [vmem:[%s1661_s4 + $0x10] sm:$0xff] }
 0xef4   :  { %v754_v2 = vadd.f32 %v752_v63, %v1506_v13 }
 0xef6   :  { %v1127_v3 = vmul.f32 -1.442695, %v754_v2 }
 0xef8   :  { %1389 = vpow2.f32 %v1127_v3 }
 0xef9   :  { %1391 = vtanh.f32 %v754_v2 }
 0xf02   :  { %v1390_v5 = vpop.eup %1389 }
 0xf03   :  { %v759_v6 = vadd.f32 1.0, %v1390_v5  ;;  %v1392_v7 = vpop.eup %1391 }
 0xf05   :  { %1393 = vrcp.f32 %v759_v6 }
 0xf0f   :  { %v1394_v4 = vpop.eup %1393 }
 0xf10   :  { %v762_v8 = vsel %vm1511_vm5, %v1392_v7, %v1394_v4 }
 0xf11   :  { %768 = vrot.lane.b32.xlu0 %v762_v8, %s1416_s3  ;;  %v766_v11 = vmul.f32 %v764_v9, %v762_v8 }
 0xf83   :  { %v769_v0 = vpop.permute.xlu0 %768 }
 0xf84   :  { %v771_v10 = vmul.f32 %v769_v0, %v762_v8 }
 0xf86   :  { %773 = vrot.lane.b32.xlu1 %v771_v10, %s1417_s10  ;;  %v1132_v10 = vld [vmem:[%s1662_s5] ss:$0 sm:$0xff] }
 0xff8   :  { %v774_v12 = vpop.permute.xlu1 %773 }
 0xff9   :  { %v776_v14 = vadd.f32 %v774_v12, %v766_v11 }
 0xffb   :  { %1395 = vtanh.f32 %v776_v14  ;;  %v876_v35 = vrot.slane %v776_v14, 6 }
0x1005   :  { %v1396_v16 = vpop.eup %1395 }
0x1006   :  { %779 = vrot.lane.b32.xlu0 %v1396_v16, %s1416_s3 }
0x1078   :  { %v780_v17 = vpop.permute.xlu0 %779 }
0x1079   :  { %v1599_v19 = vmul.f32 %v780_v17, %v762_v8 }
0x107b   :  { %v788_v20 = vrot.slane %v1599_v19, 2 }
0x107d   :  { %789 = vrot.lane.b32.xlu1 %v788_v20, %s1417_s10 }
0x10ef   :  { %v790_v21 = vpop.permute.xlu1 %789 }
0x10f0   :  { %1264 = vmatmul.mubr.msk.f32.vlgmr.msra.gmra.mrb[6].mxu1 %vm128_vm7, %v790_v21 }
0x11c3   :  { %v859_v22 = vpop.f32.mrb[6].mxu1 }
0x11c4   :  { %v864_v23 = vrot.slane %v859_v22, 4  ;;  %v1265_v25 = vpop.f32.mrb[7].mxu1 }
0x11c6   :  { %v866_v26 = vadd.f32 %v864_v23, %v1506_v13 }
0x11c8   :  { %v1129_v27 = vmul.f32 -1.442695, %v866_v26 }
0x11ca   :  { %1397 = vpow2.f32 %v1129_v27 }
0x11cb   :  { %1399 = vtanh.f32 %v866_v26 }
0x11d4   :  { %v1398_v28 = vpop.eup %1397 }
0x11d5   :  { %v871_v29 = vadd.f32 1.0, %v1398_v28  ;;  %v1400_v30 = vpop.eup %1399 }
0x11d7   :  { %1401 = vrcp.f32 %v871_v29 }
0x11e1   :  { %v1402_v31 = vpop.eup %1401 }
0x11e2   :  { %v874_v32 = vsel %vm1511_vm5, %v1400_v30, %v1402_v31 }
0x11e3   :  { %880 = vrot.lane.b32.xlu0 %v874_v32, %s1416_s3  ;;  %v878_v15 = vmul.f32 %v876_v35, %v874_v32 }
0x1255   :  { %v881_v33 = vpop.permute.xlu0 %880 }
0x1256   :  { %v883_v34 = vmul.f32 %v881_v33, %v874_v32 }
0x1258   :  { %885 = vrot.lane.b32.xlu1 %v883_v34, %s1417_s10 }
0x12ca   :  { %v886_v36 = vpop.permute.xlu1 %885 }
0x12cb   :  { %v888_v37 = vadd.f32 %v886_v36, %v878_v15 }
0x12cd   :  { %1403 = vtanh.f32 %v888_v37 }
0x12d7   :  { %v1404_v38 = vpop.eup %1403 }
0x12d8   :  { %891 = vrot.lane.b32.xlu0 %v1404_v38, %s1416_s3 }
0x134a   :  { %v892_v40 = vpop.permute.xlu0 %891 }
0x134b   :  { %v894_v41 = vmul.f32 %v892_v40, %v874_v32 }
0x134d   :  { %v900_v42 = vrot.slane %v894_v41, 4 }
0x134f   :  { %901 = vrot.lane.b32.xlu1 %v900_v42, %s1417_s10 }
0x13c1   :  { %v902_v43 = vpop.permute.xlu1 %901 }
0x13c2   :  { %1275 = vmatmul.mubr.msk.f32.vlgmr.msra.gmra.mrb[8].mxu0 %vm128_vm7, %v902_v43 }
0x1495   :  { %v971_v44 = vpop.f32.mrb[8].mxu0 }
0x1496   :  { %v976_v45 = vrot.slane %v971_v44, 2  ;;  %v1276_v46 = vpop.f32.mrb[9].mxu0 }
0x1498   :  { %v978_v47 = vadd.f32 %v976_v45, %v1506_v13  ;;  %v988_v13 = vrot.slane %v888_v37, 6 }
0x149a   :  { %v1131_v48 = vmul.f32 -1.442695, %v978_v47 }
0x149c   :  { %1405 = vpow2.f32 %v1131_v48 }
0x149d   :  { %1407 = vtanh.f32 %v978_v47 }
0x14a6   :  { %v1406_v49 = vpop.eup %1405 }
0x14a7   :  { %v983_v50 = vadd.f32 1.0, %v1406_v49  ;;  %v1408_v51 = vpop.eup %1407 }
0x14a9   :  { %1409 = vrcp.f32 %v983_v50 }
0x14b3   :  { %v1410_v52 = vpop.eup %1409 }
0x14b4   :  { %v986_v53 = vsel %vm1511_vm5, %v1408_v51, %v1410_v52 }
0x14b5   :  { %992 = vrot.lane.b32.xlu0 %v986_v53, %s1416_s3  ;;  %v990_v57 = vmul.f32 %v988_v13, %v986_v53 }
0x1527   :  { %v993_v54 = vpop.permute.xlu0 %992 }
0x1528   :  { %v995_v56 = vmul.f32 %v993_v54, %v986_v53 }
0x152a   :  { %997 = vrot.lane.b32.xlu1 %v995_v56, %s1417_s10 }
0x152e   :  { %339 = vrot.lane.b32.xlu1 %v1535_v55, %s1417_s10 }
0x1532   :  { %565 = vrot.lane.b32.xlu1 %v1569_v39, %s1417_s10  ;;  %v1014_v39 = vld [vmem:[%s1661_s4] sm:$0xff] }
0x1533   :  { %v1336_v63 = vpack.c.bf16 %v1015_v62, %v1014_v39 }
0x1535   :  { %1337 = vmatprep.subr.bf16.mxu1 %v1336_v63 }
0x1536   :  { %896 = vrot.lane.b32.xlu1 %v894_v41, %s1417_s10  ;;  %1339 = vmatpush3.bf16.msra.mxu1 %v1336_v63 }
0x159c   :  { %v998_v58 = vpop.permute.xlu1 %997 }
0x159d   :  { %v1000_v59 = vadd.f32 %v998_v58, %v990_v57 }
0x159f   :  { %1411 = vtanh.f32 %v1000_v59 }
0x15a0   :  { %v340_v24 = vpop.permute.xlu1 %339 }
0x15a1   :  { %343 = vst.msk [vmem:[#allocation2] sm:$0xc] %vm342_vm8, %v340_v24 }
0x15a4   :  { %v566_v60 = vpop.permute.xlu1 %565 }
0x15a5   :  { %569 = vst.msk [vmem:[#allocation2] sm:$0xc0] %vm568_vm9, %v566_v60 }
0x15a8   :  { %v897_v55 = vpop.permute.xlu1 %896 }
0x15a9   :  { %v1412_v61 = vpop.eup %1411  ;;  %899 = vst.msk [vmem:[#allocation2 + $0x8] sm:$0x30] %vm455_vm10, %v897_v55 }
0x15aa   :  { %1003 = vrot.lane.b32.xlu0 %v1412_v61, %s1416_s3 }
0x15ae   :  { %452 = vrot.lane.b32.xlu0 %v1552_v18, %s1417_s10  ;;  %v1017_v18 = vld [vmem:[%s1661_s4 + $0x18] sm:$0xff] }
0x15af   :  { %v1340_v2 = vpack.c.bf16 %v1017_v18, %v1016_v1 }
0x15b1   :  { %1341 = vmatprep.subr.bf16.mxu1 %v1340_v2 }
0x15b2   :  { %784 = vrot.lane.b32.xlu0 %v1599_v19, %s1417_s10  ;;  %1343 = vmatpush3.bf16.msra.mxu1 %v1340_v2 }
0x161c   :  { %v1004_v3 = vpop.permute.xlu0 %1003 }
0x161d   :  { %v1006_v5 = vmul.f32 %v1004_v3, %v986_v53 }
0x161f   :  { %1008 = vrot.lane.b32.xlu0 %v1006_v5, %s1417_s10 }
0x1620   :  { %v453_v6 = vpop.permute.xlu0 %452 }
0x1621   :  { %456 = vst.msk [vmem:[#allocation2] sm:$0x30] %vm455_vm10, %v453_v6 }
0x1624   :  { %v785_v7 = vpop.permute.xlu0 %784 }
0x1625   :  { %787 = vst.msk [vmem:[#allocation2 + $0x8] sm:$0xc] %vm342_vm8, %v785_v7 }
0x1628   :  { %v1012_v4 = vld [vmem:[#allocation2] sm:$0xff] }
0x1629   :  { %1285 = vmatprep.mubr.msk.f32.mxu1 %vm128_vm7, %v1012_v4 }
0x1691   :  { %v1009_v8 = vpop.permute.xlu0 %1008 }
0x1692   :  { %1011 = vst.msk [vmem:[#allocation2 + $0x8] sm:$0xc0] %vm568_vm9, %v1009_v8 }
0x1699   :  { %v1013_v0 = vld [vmem:[#allocation2 + $0x8] sm:$0xff] }
0x169a   :  { %1286 = vmatmul.mubr.msk.f32.vlgmr.msra.gmra.mrb[8].mxu1 %vm128_vm7, %v1013_v0 }
0x176d   :  { %v1287_v9 = vpop.f32.mrb[8].mxu1 }
0x176e   :  { %v1103_v11 = vadd.f32 %v1287_v9, %v1132_v10  ;;  %v1097_v12 = vpop.f32.mrb[9].mxu1 }
0x176f   :  { %v1098_v14 = vadd.f32 %v1132_v10, %v1097_v12 }
0x1770   :  { %1108 = vst.msk [vmem:[%s1663_s6 + $0x8] sm:$0xff] %vm1106_vm11, %v1103_v11 }
0x1771   :  { %1107 = vst.msk [vmem:[%s1663_s6] sm:$0xff] %vm1106_vm11, %v1098_v14 }

</bundles_post_ra>
